<compile_context>
chip_gen: v6e
topology: v6e:2x2x1
jax: 0.10.0
libtpu: 0.0.40
codegen_flags: <defaults>
</compile_context>

<pallas_src>
import math
import jax
import jax.numpy as jnp
from jax.experimental import pallas as pl
from jax.experimental.pallas import tpu as pltpu


# -----------------------------------------------------------------------------
# Generation-aware budgets.
# v5e / v6e: 128 MiB VMEM per core -> large tiles, ~100 MiB scoped limit.
# v7x (64 MiB physical) or unknown: conservative 48 MiB + smaller tiles.
# -----------------------------------------------------------------------------
def _tpu_budgets():
    vmem_cap = None
    try:
        vmem_cap = int(pltpu.get_tpu_info().vmem_capacity_bytes)
    except Exception:
        vmem_cap = None
    if vmem_cap is not None and vmem_cap >= 96 * 1024 * 1024:
        return 100 * 1024 * 1024, 512      # v5e / v6e
    return 48 * 1024 * 1024, 256           # v7x / fallback


_VMEM_LIMIT, _TILE_TARGET = _tpu_budgets()


def _pick_tile(n, target=None):
    """Largest tile <= target dividing n; prefer >=2 blocks and an even block
    count so parallel grid axes split evenly across v7x's 2 TensorCores."""
    if target is None:
        target = _TILE_TARGET
    cands = [t for t in (1024, 512, 256, 128, 64, 32, 16, 8) if t <= target]
    for need_even in (True, False):
        for t in cands:
            if (t <= n and n % t == 0 and n // t >= 2
                    and (not need_even or (n // t) % 2 == 0)):
                return t
    for t in cands:
        if t <= n and n % t == 0:
            return t
    # TODO(synk): pad rows to a tile multiple and mask in-kernel for awkward n.
    return n


def _const_spec(shape):
    """Constant-index weight block: index never changes across the grid, so a
    single VMEM buffer suffices (halves weight VMEM footprint)."""
    return pl.BlockSpec(shape, lambda *_: (0,) * len(shape),
                        pipeline_mode=pl.Buffered(1))


# -----------------------------------------------------------------------------
# Kernel 1: LayerNorm + fused QKV projection, gridded over row tiles of B*T.
# Emits Q / K / V as three separate bf16 outputs (no XLA slice copy).
# -----------------------------------------------------------------------------
def _ln_qkv_kernel(x_ref, wqkv_ref, g_ref, b_ref, q_ref, k_ref, v_ref):
    x = x_ref[...].astype(jnp.float32)                          # [TM, D]
    mu = jnp.mean(x, axis=-1, keepdims=True)
    var = jnp.mean((x - mu) * (x - mu), axis=-1, keepdims=True)
    h = (x - mu) * jax.lax.rsqrt(var + 1e-5) * g_ref[...] + b_ref[...]
    qkv = jnp.dot(h.astype(jnp.bfloat16), wqkv_ref[...],
                  preferred_element_type=jnp.float32)           # [TM, 3D]
    d = q_ref.shape[-1]
    q_ref[...] = qkv[:, :d].astype(q_ref.dtype)
    k_ref[...] = qkv[:, d:2 * d].astype(k_ref.dtype)
    v_ref[...] = qkv[:, 2 * d:].astype(v_ref.dtype)


def ln_qkv(x2, wqkv, g, b):
    BT, D = x2.shape
    D3 = wqkv.shape[1]
    tm = _pick_tile(BT)
    shp = jax.ShapeDtypeStruct((BT, D), jnp.bfloat16)
    row = pl.BlockSpec((tm, D), lambda i: (i, 0))
    # TODO(synk): at very large D, also tile the 3D output axis of wqkv.
    return pl.pallas_call(
        _ln_qkv_kernel,
        out_shape=(shp, shp, shp),
        grid_spec=pltpu.PrefetchScalarGridSpec(
            num_scalar_prefetch=0,
            grid=(BT // tm,),
            in_specs=[
                pl.BlockSpec((tm, D), lambda i: (i, 0)),
                _const_spec((D, D3)),
                _const_spec((1, D)),
                _const_spec((1, D)),
            ],
            out_specs=(row, row, row),
        ),
        compiler_params=pltpu.CompilerParams(
            dimension_semantics=("parallel",),
            vmem_limit_bytes=_VMEM_LIMIT),
    )(x2, wqkv, g, b)


# -----------------------------------------------------------------------------
# Kernel 2: flash-style attention.  grid = (B, q_tiles, kv_tiles).
# Online softmax state (m, l, acc) lives in f32 VMEM scratch; init at ki==0,
# finalize at last kv tile.  1/sqrt(D) is already folded into wq.
# -----------------------------------------------------------------------------
def _flash_attn_kernel(q_ref, k_ref, v_ref, o_ref, m_sc, l_sc, acc_sc):
    ki = pl.program_id(2)

    @pl.when(ki == 0)
    def _():
        m_sc[...] = jnp.full_like(m_sc, -jnp.inf)
        l_sc[...] = jnp.zeros_like(l_sc)
        acc_sc[...] = jnp.zeros_like(acc_sc)

    q = q_ref[0]                                                # [TQ, D] bf16
    k = k_ref[0]                                                # [TK, D] bf16
    v = v_ref[0]                                                # [TK, D] bf16

    # contraction on last dims -> no explicit k.T materialization
    s = jax.lax.dot_general(q, k, (((1,), (1,)), ((), ())),
                            preferred_element_type=jnp.float32)  # [TQ, TK]
    # TODO(synk): sequence/attention mask (if required by the concrete model)
    # would be applied to `s` here.

    m_prev = m_sc[...]
    m_new = jnp.maximum(m_prev, jnp.max(s, axis=-1, keepdims=True))
    alpha = jnp.exp(m_prev - m_new)
    p = jnp.exp(s - m_new)
    l_sc[...] = alpha * l_sc[...] + jnp.sum(p, axis=-1, keepdims=True)
    acc_sc[...] = alpha * acc_sc[...] + jnp.dot(
        p.astype(jnp.bfloat16), v, preferred_element_type=jnp.float32)
    m_sc[...] = m_new

    @pl.when(ki == pl.num_programs(2) - 1)
    def _():
        o_ref[0] = (acc_sc[...] *
                    pl.reciprocal(l_sc[...], approx=True)).astype(o_ref.dtype)


def flash_attention(q, k, v):
    B, T, D = q.shape
    tq = _pick_tile(T)
    tk = _pick_tile(T)
    return pl.pallas_call(
        _flash_attn_kernel,
        out_shape=jax.ShapeDtypeStruct((B, T, D), jnp.bfloat16),
        grid_spec=pltpu.PrefetchScalarGridSpec(
            num_scalar_prefetch=0,
            grid=(B, T // tq, T // tk),
            in_specs=[
                pl.BlockSpec((1, tq, D), lambda b, qi, ki: (b, qi, 0)),
                pl.BlockSpec((1, tk, D), lambda b, qi, ki: (b, ki, 0)),
                pl.BlockSpec((1, tk, D), lambda b, qi, ki: (b, ki, 0)),
            ],
            out_specs=pl.BlockSpec((1, tq, D), lambda b, qi, ki: (b, qi, 0)),
            scratch_shapes=[
                pltpu.VMEM((tq, 1), jnp.float32),   # running max
                pltpu.VMEM((tq, 1), jnp.float32),   # running denom
                pltpu.VMEM((tq, D), jnp.float32),   # running numerator
            ],
        ),
        compiler_params=pltpu.CompilerParams(
            dimension_semantics=("parallel", "parallel", "arbitrary"),
            vmem_limit_bytes=_VMEM_LIMIT),
    )(q, k, v)


# -----------------------------------------------------------------------------
# Kernel 3: output projection + residual + LayerNorm + FFN + residual.
# Grid = (row tiles, Dff tiles); the Dff axis is a reduction so w1/w2 are
# streamed in tiles instead of being fully VMEM-resident (v7x requirement).
# -----------------------------------------------------------------------------
def _proj_ffn_kernel(x_ref, a_ref, wo_ref, g_ref, b_ref,
                     w1_ref, b1_ref, w2_ref, b2_ref, o_ref,
                     x1_sc, h_sc, acc_sc):
    fi = pl.program_id(1)

    @pl.when(fi == 0)
    def _():
        x1 = x_ref[...].astype(jnp.float32) + jnp.dot(
            a_ref[...], wo_ref[...], preferred_element_type=jnp.float32)
        mu = jnp.mean(x1, axis=-1, keepdims=True)
        var = jnp.mean((x1 - mu) * (x1 - mu), axis=-1, keepdims=True)
        h = (x1 - mu) * jax.lax.rsqrt(var + 1e-5) * g_ref[...] + b_ref[...]
        x1_sc[...] = x1
        h_sc[...] = h.astype(jnp.bfloat16)
        acc_sc[...] = jnp.zeros_like(acc_sc)

    f = jnp.dot(h_sc[...], w1_ref[...],
                preferred_element_type=jnp.float32) + b1_ref[...]
    f = jax.nn.gelu(f)
    acc_sc[...] += jnp.dot(f.astype(jnp.bfloat16), w2_ref[...],
                           preferred_element_type=jnp.float32)

    @pl.when(fi == pl.num_programs(1) - 1)
    def _():
        o_ref[...] = (x1_sc[...] + acc_sc[...] + b2_ref[...]).astype(o_ref.dtype)
        # TODO(synk): optionally fuse the LM-head + CE epilogue here (v7x)
        # to save one [BT, D] HBM round trip when labels are provided.


def proj_ffn(x2, attn2, p):
    BT, D = x2.shape
    Dff = p["w1"].shape[1]
    tm = _pick_tile(BT)
    tf = _pick_tile(Dff)
    return pl.pallas_call(
        _proj_ffn_kernel,
        out_shape=jax.ShapeDtypeStruct((BT, D), jnp.bfloat16),
        grid_spec=pltpu.PrefetchScalarGridSpec(
            num_scalar_prefetch=0,
            grid=(BT // tm, Dff // tf),
            in_specs=[
                pl.BlockSpec((tm, D), lambda i, f: (i, 0)),
                pl.BlockSpec((tm, D), lambda i, f: (i, 0)),
                _const_spec((D, D)),
                _const_spec((1, D)),
                _const_spec((1, D)),
                pl.BlockSpec((D, tf), lambda i, f: (0, f)),
                pl.BlockSpec((1, tf), lambda i, f: (0, f)),
                pl.BlockSpec((tf, D), lambda i, f: (f, 0)),
                _const_spec((1, D)),
            ],
            out_specs=pl.BlockSpec((tm, D), lambda i, f: (i, 0)),
            scratch_shapes=[
                pltpu.VMEM((tm, D), jnp.float32),    # x1 (residual, f32)
                pltpu.VMEM((tm, D), jnp.bfloat16),   # LN(x1) for the FFN matmuls
                pltpu.VMEM((tm, D), jnp.float32),    # FFN accumulator
            ],
        ),
        compiler_params=pltpu.CompilerParams(
            dimension_semantics=("parallel", "arbitrary"),
            vmem_limit_bytes=_VMEM_LIMIT),
    )(x2, attn2, p["wo"], p["ln2_g"], p["ln2_b"],
      p["w1"], p["b1"], p["w2"], p["b2"])


def transformer_block(x, p):
    B, T, D = x.shape
    BT = B * T
    x2 = x.reshape(BT, D)                                      # bf16 activations
    q, k, v = ln_qkv(x2, p["wqkv"], p["ln1_g"], p["ln1_b"])    # Pallas, bf16 out
    attn = flash_attention(q.reshape(B, T, D),
                           k.reshape(B, T, D),
                           v.reshape(B, T, D))                 # Pallas, bf16 out
    out = proj_ffn(x2, attn.reshape(BT, D), p)                 # Pallas, bf16 out
    return out.reshape(B, T, D)


# -----------------------------------------------------------------------------
# Kernel 4: LM head + softmax cross entropy.
# Grid = (row tiles, vocab tiles): vocab axis is an online-logsumexp reduction
# (scales to large V / v7x VMEM); per-row losses are emitted under "parallel"
# row semantics and reduced with a tiny jnp.mean in the wrapper.
# -----------------------------------------------------------------------------
def _ce_kernel(h_ref, lbl_ref, w_ref, part_ref, m_sc, l_sc, t_sc):
    vi = pl.program_id(1)

    @pl.when(vi == 0)
    def _():
        m_sc[...] = jnp.full_like(m_sc, -jnp.inf)
        l_sc[...] = jnp.zeros_like(l_sc)
        t_sc[...] = jnp.zeros_like(t_sc)

    logits = jnp.dot(h_ref[...], w_ref[...],
                     preferred_element_type=jnp.float32)        # [TM, TV]
    col = (jax.lax.broadcasted_iota(jnp.int32, logits.shape, 1)
           + vi * logits.shape[1])
    t_sc[...] += jnp.sum(jnp.where(col == lbl_ref[...], logits, 0.0),
                         axis=-1, keepdims=True)

    m_prev = m_sc[...]
    m_new = jnp.maximum(m_prev, jnp.max(logits, axis=-1, keepdims=True))
    l_sc[...] = (jnp.exp(m_prev - m_new) * l_sc[...]
                 + jnp.sum(jnp.exp(logits - m_new), axis=-1, keepdims=True))
    m_sc[...] = m_new

    @pl.when(vi == pl.num_programs(1) - 1)
    def _():
        part_ref[...] = m_sc[...] + jnp.log(l_sc[...]) - t_sc[...]


def ce_loss(hidden2d, labels2d, lm_head):
    BT, D = hidden2d.shape
    V = lm_head.shape[1]
    tm = _pick_tile(BT)
    tv = _pick_tile(V)
    per_row = pl.pallas_call(
        _ce_kernel,
        out_shape=jax.ShapeDtypeStruct((BT, 1), jnp.float32),
        grid_spec=pltpu.PrefetchScalarGridSpec(
            num_scalar_prefetch=0,
            grid=(BT // tm, V // tv),
            in_specs=[
                pl.BlockSpec((tm, D), lambda i, v: (i, 0)),
                # TODO(synk): labels could instead be scalar-prefetched into
                # SMEM; the (tm, 1) lane-padded block is negligible here.
                pl.BlockSpec((tm, 1), lambda i, v: (i, 0)),
                pl.BlockSpec((D, tv), lambda i, v: (0, v)),
            ],
            out_specs=pl.BlockSpec((tm, 1), lambda i, v: (i, 0)),
            scratch_shapes=[pltpu.VMEM((tm, 1), jnp.float32)] * 3,
        ),
        compiler_params=pltpu.CompilerParams(
            dimension_semantics=("parallel", "arbitrary"),
            vmem_limit_bytes=_VMEM_LIMIT),
    )(hidden2d, labels2d, lm_head)
    return jnp.mean(per_row)


# -----------------------------------------------------------------------------
# ModelBase-style wrapper (registry / dispatch structure mirrored in JAX).
# -----------------------------------------------------------------------------
class ModelBase:
    _registry = dict()

    @classmethod
    def register(cls, name):
        ModelBase._registry[name] = cls

    @staticmethod
    def by_name(name):
        return ModelBase._registry[name]

    @staticmethod
    def create(hparams, *args, **kwargs):
        return ModelBase.by_name(hparams["model"])(hparams, *args, **kwargs)

    def __init__(self, hparams):
        self.init_checkpoint = hparams.get("init_checkpoint")  # not loaded (synthetic)
        self.abandon_label = hparams.get("abandon_label", False)
        self.use_gpu = hparams.get("use_gpu", False)
        self.gpu = hparams.get("gpu", 0)
        self.training = False

    def train(self):
        self.training = True

    def eval(self):
        self.training = False

    # abstract in the original module:
    def _create_parameters(self):
        raise NotImplementedError

    def _forward(self, inputs, **kw):
        raise NotImplementedError

    def _collect_metrics(self, inputs, outputs, with_label, data_file):
        raise NotImplementedError

    def _optimize(self, loss, optimizer, lr_scheduler):
        # TODO(synk): optimizer step is training-loop glue with no Pallas equivalent.
        raise NotImplementedError

    def _infer(self, inputs, *a, **kw):
        raise NotImplementedError

    def forward(self, inputs, audios=None, transcripts=None, tokenizer=None,
                is_training=False, with_label=False, data_file=None):
        if is_training:
            self.train()
        else:
            self.eval()
        with_label = False if self.abandon_label else with_label
        outputs = self._forward(inputs, audios=audios, transcripts=transcripts,
                                tokenizer=tokenizer, is_training=is_training,
                                with_label=with_label)
        metrics = self._collect_metrics(inputs, outputs, with_label=with_label,
                                        data_file=data_file)
        return metrics

    def infer(self, inputs, audios=None, transcripts=None, tokenizer=None,
              start_id=None, eos_id=None, max_gen_len=None, prev_input=None):
        self.eval()
        return self._infer(inputs, audios, transcripts, tokenizer,
                           start_id=start_id, eos_id=eos_id,
                           max_gen_len=max_gen_len, prev_input=prev_input)


def fuse_params(raw):
    """Host-side, one-time parameter prep: fold 1/sqrt(D) into wq, fuse QKV,
    cast matmul weights / embedding to bf16 (f32 accumulation in-kernel)."""
    # TODO(synk): on v7x, fp8(e4m3) weights with a per-tensor scale would
    # further halve weight VMEM; kept bf16 here for v5e/v6e portability.
    d = raw["wq"].shape[0]
    scale = 1.0 / math.sqrt(d)
    wqkv = jnp.concatenate([raw["wq"] * scale, raw["wk"], raw["wv"]], axis=1)
    return {
        "embedding": raw["embedding"].astype(jnp.bfloat16),
        "wqkv": wqkv.astype(jnp.bfloat16),
        "wo": raw["wo"].astype(jnp.bfloat16),
        "w1": raw["w1"].astype(jnp.bfloat16),
        "b1": raw["b1"].astype(jnp.float32),
        "w2": raw["w2"].astype(jnp.bfloat16),
        "b2": raw["b2"].astype(jnp.float32),
        "ln1_g": raw["ln1_g"].astype(jnp.float32),
        "ln1_b": raw["ln1_b"].astype(jnp.float32),
        "ln2_g": raw["ln2_g"].astype(jnp.float32),
        "ln2_b": raw["ln2_b"].astype(jnp.float32),
        "lm_head": raw["lm_head"].astype(jnp.bfloat16),
    }


class UnifiedTransformer(ModelBase):
    """Minimal concrete realization of the abstract hooks (Pallas hot paths)."""

    def __init__(self, hparams, raw_params):
        super().__init__(hparams)
        self.params = fuse_params(raw_params)

    def _forward(self, inputs, **kw):
        # glue: embedding lookup in plain JAX (bf16 table -> bf16 activations)
        emb = jnp.take(self.params["embedding"], inputs["src_token"], axis=0)  # [B,T,D]
        hidden = transformer_block(emb, self.params)                            # Pallas
        return {"hidden": hidden}

    def _collect_metrics(self, inputs, outputs, with_label, data_file):
        if not with_label:
            # TODO(synk): unlabeled metric path is model-specific in the original repo.
            return {"loss": None}
        B, T, D = outputs["hidden"].shape
        h2 = outputs["hidden"].reshape(B * T, D)
        labels = inputs["label_token"].reshape(B * T, 1).astype(jnp.int32)
        loss = ce_loss(h2, labels, self.params["lm_head"])                       # Pallas
        return {"loss": loss, "nll": loss}

    def _infer(self, inputs, *a, **kw):
        return self._forward(inputs)


UnifiedTransformer.register("UnifiedTransformer")


# -----------------------------------------------------------------------------
def make_params(key, vocab, d, dff):
    ks = jax.random.split(key, 8)
    s = lambda k, shape, scale: (jax.random.normal(k, shape, jnp.float32) * scale)
    return {
        "embedding": s(ks[0], (vocab, d), 0.02),
        "wq": s(ks[1], (d, d), 0.05),
        "wk": s(ks[2], (d, d), 0.05),
        "wv": s(ks[3], (d, d), 0.05),
        "wo": s(ks[4], (d, d), 0.05),
        "w1": s(ks[5], (d, dff), 0.05),
        "b1": jnp.zeros((1, dff), jnp.float32),
        "w2": s(ks[6], (dff, d), 0.05),
        "b2": jnp.zeros((1, d), jnp.float32),
        "ln1_g": jnp.ones((1, d), jnp.float32),
        "ln1_b": jnp.zeros((1, d), jnp.float32),
        "ln2_g": jnp.ones((1, d), jnp.float32),
        "ln2_b": jnp.zeros((1, d), jnp.float32),
        "lm_head": s(ks[7], (d, vocab), 0.05),
    }


if __name__ == "__main__":
    # D/DFF/V chosen as multiples of 128 so every lane dimension is dense.
    B, T, D, DFF, V = 2, 8, 128, 256, 256

    key = jax.random.PRNGKey(0)
    kp, kt, kl = jax.random.split(key, 3)
    raw_params = make_params(kp, V, D, DFF)

    inputs = {
        "src_token": jax.random.randint(kt, (B, T), 0, V),
        "label_token": jax.random.randint(kl, (B, T), 0, V),
    }

    hparams = {"model": "UnifiedTransformer", "init_checkpoint": None,
               "abandon_label": False, "use_gpu": False, "gpu": 0}
    model = ModelBase.create(hparams, raw_params)

    metrics = model.forward(inputs, is_training=False, with_label=True)
    loss = jax.block_until_ready(metrics["loss"])
    assert jnp.isfinite(loss)
    # random-init CE should sit near ln(V) ~ 5.5; generous sanity window
    assert 1.0 < float(loss) < 12.0

    results = model.infer(inputs)
    hidden = jax.block_until_ready(results["hidden"])
    assert hidden.shape == (B, T, D)
    assert bool(jnp.all(jnp.isfinite(hidden)))

    print("KERNEL_OK")
</pallas_src>

<mosaic_0001>
module attributes {stable_mosaic.version = 11 : i64} {
  func.func @_ln_qkv_kernel(%arg0: i32, %arg1: memref<8x128xbf16, #tpu.memory_space<vmem>>, %arg2: memref<128x384xbf16, #tpu.memory_space<vmem>>, %arg3: memref<1x128xf32, #tpu.memory_space<vmem>>, %arg4: memref<1x128xf32, #tpu.memory_space<vmem>>, %arg5: memref<8x128xbf16, #tpu.memory_space<vmem>>, %arg6: memref<8x128xbf16, #tpu.memory_space<vmem>>, %arg7: memref<8x128xbf16, #tpu.memory_space<vmem>>) attributes {dimension_semantics = [#tpu.dimension_semantics<parallel>], iteration_bounds = array<i64: 2>, scalar_prefetch = 0 : i64, scratch_operands = 0 : i64, tpu.core_type = #tpu.core_type<tc>, window_params = [{transform_indices = @transform_0, window_bounds = array<i64: 8, 128>}, {pipeline_mode = #tpu.pipeline_mode<synchronous>, transform_indices = @transform_1, window_bounds = array<i64: 128, 384>}, {pipeline_mode = #tpu.pipeline_mode<synchronous>, transform_indices = @transform_2, window_bounds = array<i64: 1, 128>}, {pipeline_mode = #tpu.pipeline_mode<synchronous>, transform_indices = @transform_3, window_bounds = array<i64: 1, 128>}, {transform_indices = @transform_4, window_bounds = array<i64: 8, 128>}, {transform_indices = @transform_5, window_bounds = array<i64: 8, 128>}, {transform_indices = @transform_6, window_bounds = array<i64: 8, 128>}]} {
    %c0 = arith.constant 0 : index
    %c0_0 = arith.constant 0 : index
    %0 = vector.load %arg1[%c0, %c0_0] : memref<8x128xbf16, #tpu.memory_space<vmem>>, vector<8x128xbf16>
    %1 = arith.extf %0 : vector<8x128xbf16> to vector<8x128xf32>
    %cst = arith.constant dense<0.000000e+00> : vector<8xf32>
    %2 = vector.multi_reduction <add>, %1, %cst [1] : vector<8x128xf32> to vector<8xf32>
    %3 = vector.shape_cast %2 : vector<8xf32> to vector<8x1xf32>
    %cst_1 = arith.constant 1.280000e+02 : f32
    %4 = vector.broadcast %cst_1 : f32 to vector<8x1xf32>
    %5 = arith.divf %3, %4 : vector<8x1xf32>
    %6 = vector.broadcast %5 : vector<8x1xf32> to vector<8x128xf32>
    %7 = arith.subf %1, %6 : vector<8x128xf32>
    %8 = vector.broadcast %5 : vector<8x1xf32> to vector<8x128xf32>
    %9 = arith.subf %1, %8 : vector<8x128xf32>
    %10 = arith.mulf %7, %9 : vector<8x128xf32>
    %cst_2 = arith.constant dense<0.000000e+00> : vector<8xf32>
    %11 = vector.multi_reduction <add>, %10, %cst_2 [1] : vector<8x128xf32> to vector<8xf32>
    %12 = vector.shape_cast %11 : vector<8xf32> to vector<8x1xf32>
    %cst_3 = arith.constant 1.280000e+02 : f32
    %13 = vector.broadcast %cst_3 : f32 to vector<8x1xf32>
    %14 = arith.divf %12, %13 : vector<8x1xf32>
    %15 = vector.broadcast %5 : vector<8x1xf32> to vector<8x128xf32>
    %16 = arith.subf %1, %15 : vector<8x128xf32>
    %cst_4 = arith.constant 9.99999974E-6 : f32
    %17 = vector.broadcast %cst_4 : f32 to vector<8x1xf32>
    %18 = arith.addf %14, %17 : vector<8x1xf32>
    %19 = math.rsqrt %18 : vector<8x1xf32>
    %20 = vector.broadcast %19 : vector<8x1xf32> to vector<8x128xf32>
    %21 = arith.mulf %16, %20 : vector<8x128xf32>
    %c0_5 = arith.constant 0 : index
    %c0_6 = arith.constant 0 : index
    %22 = vector.load %arg3[%c0_5, %c0_6] : memref<1x128xf32, #tpu.memory_space<vmem>>, vector<1x128xf32>
    %23 = vector.broadcast %22 : vector<1x128xf32> to vector<8x128xf32>
    %24 = arith.mulf %21, %23 : vector<8x128xf32>
    %c0_7 = arith.constant 0 : index
    %c0_8 = arith.constant 0 : index
    %25 = vector.load %arg4[%c0_7, %c0_8] : memref<1x128xf32, #tpu.memory_space<vmem>>, vector<1x128xf32>
    %26 = vector.broadcast %25 : vector<1x128xf32> to vector<8x128xf32>
    %27 = arith.addf %24, %26 : vector<8x128xf32>
    %28 = arith.truncf %27 : vector<8x128xf32> to vector<8x128xbf16>
    %c0_9 = arith.constant 0 : index
    %c0_10 = arith.constant 0 : index
    %29 = vector.load %arg2[%c0_9, %c0_10] : memref<128x384xbf16, #tpu.memory_space<vmem>>, vector<128x384xbf16>
    %cst_11 = arith.constant dense<0.000000e+00> : vector<8x384xf32>
    %30 = tpu.matmul %28, %29, %cst_11 {dimension_numbers = #tpu.dot_dimension_numbers<[1], [0], [0], [1], [0, 0, 1, 1], [], []>} : vector<8x128xbf16>, vector<128x384xbf16>, vector<8x384xf32> -> vector<8x384xf32>
    %31 = vector.extract_strided_slice %30 {offsets = [0, 0], sizes = [8, 128], strides = [1, 1]} : vector<8x384xf32> to vector<8x128xf32>
    %32 = arith.truncf %31 : vector<8x128xf32> to vector<8x128xbf16>
    %c0_12 = arith.constant 0 : index
    %c0_13 = arith.constant 0 : index
    %33 = vector.load %arg5[%c0_12, %c0_13] : memref<8x128xbf16, #tpu.memory_space<vmem>>, vector<8x128xbf16>
    tpu.vector_store %arg5[%c0_12, %c0_13], %32 {strides = array<i32>} : memref<8x128xbf16, #tpu.memory_space<vmem>>, vector<8x128xbf16>,
    %34 = vector.extract_strided_slice %30 {offsets = [0, 128], sizes = [8, 128], strides = [1, 1]} : vector<8x384xf32> to vector<8x128xf32>
    %35 = arith.truncf %34 : vector<8x128xf32> to vector<8x128xbf16>
    %c0_14 = arith.constant 0 : index
    %c0_15 = arith.constant 0 : index
    %36 = vector.load %arg6[%c0_14, %c0_15] : memref<8x128xbf16, #tpu.memory_space<vmem>>, vector<8x128xbf16>
    tpu.vector_store %arg6[%c0_14, %c0_15], %35 {strides = array<i32>} : memref<8x128xbf16, #tpu.memory_space<vmem>>, vector<8x128xbf16>,
    %37 = vector.extract_strided_slice %30 {offsets = [0, 256], sizes = [8, 128], strides = [1, 1]} : vector<8x384xf32> to vector<8x128xf32>
    %38 = arith.truncf %37 : vector<8x128xf32> to vector<8x128xbf16>
    %c0_16 = arith.constant 0 : index
    %c0_17 = arith.constant 0 : index
    %39 = vector.load %arg7[%c0_16, %c0_17] : memref<8x128xbf16, #tpu.memory_space<vmem>>, vector<8x128xbf16>
    tpu.vector_store %arg7[%c0_16, %c0_17], %38 {strides = array<i32>} : memref<8x128xbf16, #tpu.memory_space<vmem>>, vector<8x128xbf16>,
    return
  }
  func.func @transform_0(%arg0: i32) -> (i32, i32) {
    %c0_i32 = arith.constant 0 : i32
    %c0_i32_0 = arith.constant 0 : i32
    return %arg0, %c0_i32 : i32, i32
  }
  func.func @transform_1(%arg0: i32) -> (i32, i32) {
    %c0_i32 = arith.constant 0 : i32
    %c0_i32_0 = arith.constant 0 : i32
    %c0_i32_1 = arith.constant 0 : i32
    return %c0_i32, %c0_i32_0 : i32, i32
  }
  func.func @transform_2(%arg0: i32) -> (i32, i32) {
    %c0_i32 = arith.constant 0 : i32
    %c0_i32_0 = arith.constant 0 : i32
    %c0_i32_1 = arith.constant 0 : i32
    return %c0_i32, %c0_i32_0 : i32, i32
  }
  func.func @transform_3(%arg0: i32) -> (i32, i32) {
    %c0_i32 = arith.constant 0 : i32
    %c0_i32_0 = arith.constant 0 : i32
    %c0_i32_1 = arith.constant 0 : i32
    return %c0_i32, %c0_i32_0 : i32, i32
  }
  func.func @transform_4(%arg0: i32) -> (i32, i32) {
    %c0_i32 = arith.constant 0 : i32
    %c0_i32_0 = arith.constant 0 : i32
    return %arg0, %c0_i32 : i32, i32
  }
  func.func @transform_5(%arg0: i32) -> (i32, i32) {
    %c0_i32 = arith.constant 0 : i32
    %c0_i32_0 = arith.constant 0 : i32
    return %arg0, %c0_i32 : i32, i32
  }
  func.func @transform_6(%arg0: i32) -> (i32, i32) {
    %c0_i32 = arith.constant 0 : i32
    %c0_i32_0 = arith.constant 0 : i32
    return %arg0, %c0_i32 : i32, i32
  }
}

</mosaic_0001>

<bundles_post_ra>
// kernel: tpu_custom_call.1
= control target key start
LH: loop header
LB: loop body
LE: loop exit
PB: predicated region body
PF: predicated region fallthrough
CT: control target
= control target key end

     0   :  { %s1423_s0 = inlined_call_operand.hbm [shape: bf16[16,128], index: 0, kind: input, shape index: {}]   ;;  %s1424_s1 = inlined_call_operand.hbm [shape: bf16[128,384], index: 1, kind: input, shape index: {}]   ;;  %s1425_s2 = inlined_call_operand.vmem [shape: f32[1,128], index: 2, kind: input, shape index: {}]   ;;  %s1426_s3 = inlined_call_operand.vmem [shape: f32[1,128], index: 3, kind: input, shape index: {}]   ;;  %s1427_s4 = inlined_call_operand.hbm [shape: bf16[16,128], index: 4, kind: output, shape index: {0}]   ;;  %s1428_s5 = inlined_call_operand.hbm [shape: bf16[16,128], index: 5, kind: output, shape index: {1}]   ;;  %s1429_s6 = inlined_call_operand.hbm [shape: bf16[16,128], index: 6, kind: output, shape index: {2}]  }
   0x1   :  { %1436 = sst [smem:[#allocation15_spill]] %s1423_s0 }
   0x2   :  { %1437 = sst [smem:[#allocation16_spill]] %s1424_s1 }
   0x3   :  { %12 = vsyncpa [#allocation3], 0 }
   0x4   :  { %14 = vsyncpa [#allocation3 + $0x1], 0 }
   0x5   :  { %15 = vsyncpa [#allocation6], 0 }
   0x6   :  { %16 = vsyncpa [#allocation4], 0 }
   0x7   :  { %18 = vsyncpa [#allocation4 + $0x1], 0 }
   0x8   :  { %19 = vsyncpa [#allocation9], 0 }
   0x9   :  { %21 = vsyncpa [#allocation9 + $0x1], 0  ;;  %s1176_s21 = smov 0   ;;  %s1178_s22 = smov 0  }
   0xa   :  { %s1180_s23 = smov 0   ;;  %s1182_s24 = smov 0  }
   0xb LB: > { %s1197_s25 = sadd.s32 4294967295, %s1129_s24   ;;  %s1432_s26 = sadd.s32 4294967294, %s1129_s24   ;;  %s1129_s24 = sphi %s1182_s24, %s1460_s24   ;;  %s1125_s23 = sphi %s1180_s23, %s1459_s23   ;;  %s1121_s22 = sphi %s1178_s22, %s1458_s22   ;;  %s1117_s21 = sphi %s1176_s21, %s1457_s21  }
   0xc   : > { %p47_p0 = scmp.ne.s32.totalorder %s1121_s22, %s1117_s21  ;;  %p1430_p1 = scmp.eq.s32.totalorder %s1197_s25, 0 }
   0xd   : > { %p140_p3 = scmp.eq.s32.totalorder %s1432_s26, 1  ;;  %p771_p5 = scmp.ge.s32.totalorder %s1129_s24, 1 }
   0xe   : > { %p1208_p4 = por %p1430_p1, %p47_p0  ;;  %p199_p7 = scmp.lt.s32.totalorder %s1129_s24, 3 }
   0xf   : > { %p1213_p6 = por %p140_p3, %p47_p0  ;;  %s1131_s30 = smov [#allocation5]  }
  0x10   : > { %s1438_s27 = scalar_select %p1208_p4, 1, 0 }
  0x11   : > { %s1439_s28 = scalar_select %p1213_p6, 1, 0 }
  0x12   : > { %p1218_p8 = pnand %p771_p5, %p199_p7  ;;  %s211_s7 = sshll.u32 %s1131_s30, 4  ;;  %s212_s7 = int_to_ptr.vmem [resolvable:$true] %s211_s7 }
  0x13   : > { %s1232_s9 = sadd.s32 1, %s1129_s24   ;;  %s34_s10 = sadd.s32 1, %s1125_s23 }
  0x14   : > { %s1440_s29 = scalar_select %p1218_p8, 1, 0 }
  0x15   : > { %p857_p9 = pneg %p1218_p8  ;;  %s31_s11 = ssub.s32 %s1129_s24, %s1232_s9 }
  0x16   : > { %s962_s12 = scalar_lea.vmem %s212_s7, 3072  ;;  %p970_p5 = scmp.lt.s32.totalorder %s212_s7, %s212_s7 }
  0x17   : > { %p1227_p11 = pnand %p857_p9, %p1430_p1  ;;  %p963_p13 = scmp.ne.s32.totalorder %s212_s7, %s962_s12 }
  0x18   : > { %p971_p7 = scmp.lt.s32.totalorder %s962_s12, %s962_s12 }
  0x19   : > { %p953_p12 = pneg %p1227_p11 }
  0x1a   : > { %p972_p10 = por %p971_p7, %p970_p5 }
  0x1b   : > { %p965_p0 = pnand %p963_p13, %p953_p12 }
  0x1d   : > { %p966_p3 = pneg %p965_p0 }
  0x1f   : > { %p973_p2 = pnand %p972_p10, %p966_p3 }
  0x21   : > { %976 = shalt.err (!%p973_p2)
}
  0x22   : > { %s1132_s13 = smov 192   ;;  %s1133_s14 = smov 12  }
  0x23   : > { %s1442_s1 = sld [smem:[#allocation16_spill]]  ;;  %p32_p9 = scmp.eq.s32.totalorder %s31_s11, 0 }
  0x24   : > { %p41_p12 = scmp.ne.s32.totalorder %s1125_s23, %s1121_s22  ;;  %p42_p10 = scmp.eq.s32.totalorder %s1129_s24, 0 }
  0x25   : > { %p876_p2 = scmp.lt.s32.totalorder %s1129_s24, 2  ;;  %p1443_p0 = scmp.eq.s32.totalorder %s1197_s25, 1 }
  0x26   : > { %s1249_s17 = scalar_select %p32_p9, %s1125_s23, %s34_s10  }
  0x27   : > { %p43_p13 = por %p42_p10, %p41_p12  ;;  %p1253_p3 = por %p1443_p0, %p41_p12 }
  0x28   : > { %s231_s19 = sand.u32 1, %s1125_s23   ;;  %s775_s20 = sshll.u32 %s1129_s24, 6 }
  0x29   : > { %860 = dma.hbm_to_vmem [thread:$0]  (!%p1227_p11), %s1442_s1, 3072, %s212_s7, [#allocation6], %s1132_s13, %s1132_s13, %s1133_s14  }
  0x2a   : > { %s1444_s18 = scalar_select %p1253_p3, 1, 0 }
  0x2b   : > { %s774_s30 = sshll.u32 %s231_s19, 2  ;;  %s1445_s0 = sld [smem:[#allocation15_spill]] }
  0x2c   : > { %s235_s7 = scalar_lea.vmem [#allocation2], %s774_s30  ;;  %p1264_p11 = pnand %p876_p2, %p43_p13 }
  0x2d   : > { %s242_s10 = sshll.u32 %s235_s7, 4  ;;  %s232_s13 = scalar_lea.sflag [#allocation3], %s231_s19  ;;  %s243_s10 = int_to_ptr.vmem [resolvable:$true] %s242_s10 }
  0x2e   : > { %p979_p7 = pneg %p1264_p11 }
  0x31   : > { %s1262_s15 = scalar_lea.hbm %s1445_s0, %s775_s20  ;;  %s982_s8 = scalar_lea.hbm %s1445_s0, 128 }
  0x32   : > { %s977_s14 = scalar_lea.hbm %s1262_s15, 64  ;;  %p983_p10 = scmp.lt.s32.totalorder %s1262_s15, %s1445_s0 }
  0x33   : > { %p978_p5 = scmp.ne.s32.totalorder %s1262_s15, %s977_s14  ;;  %p984_p2 = scmp.lt.s32.totalorder %s982_s8, %s977_s14 }
  0x35   : > { %p980_p9 = pnand %p979_p7, %p978_p5  ;;  %p985_p13 = por %p984_p2, %p983_p10 }
  0x37   : > { %p981_p12 = pneg %p980_p9 }
  0x39   : > { %p986_p0 = pnand %p985_p13, %p981_p12 }
  0x3b   : > { %989 = shalt.err (!%p986_p0)
}
  0x3c   : > { %s990_s7 = scalar_lea.vmem %s243_s10, 64  ;;  %s1134_s19 = smov [#allocation2]  }
  0x3d   : > { %p991_p1 = scmp.ne.s32.totalorder %s243_s10, %s990_s7  ;;  %s995_s26 = sshll.u32 %s1134_s19, 4  ;;  %s996_s26 = int_to_ptr.vmem [resolvable:$false] %s995_s26 }
  0x3e   : > { %s997_s1 = scalar_lea.vmem %s996_s26, 128  ;;  %p998_p5 = scmp.lt.s32.totalorder %s243_s10, %s996_s26 }
  0x3f   : > { %p993_p6 = pnand %p991_p1, %p979_p7  ;;  %p999_p9 = scmp.lt.s32.totalorder %s997_s1, %s990_s7 }
  0x41   : > { %p994_p3 = pneg %p993_p6  ;;  %p1000_p4 = por %p999_p9, %p998_p5 }
  0x43   : > { %p1001_p8 = pnand %p1000_p4, %p994_p3 }
  0x45   : > { %1004 = shalt.err (!%p1001_p8)
}
  0x46   : > { %864 = dma.hbm_to_vmem [thread:$0]  (!%p1264_p11), %s1262_s15, 64, %s243_s10, %s232_s13  }
  0x47   : > { %p1447_p12 = scmp.ne.s32.totalorder %s1440_s29, 0 }
  0x48   : > { %s1285_s14 = sand.u32 (!%p1447_p12), 1, %s1121_s22   ;;  %p1448_p1 = scmp.ne.s32.totalorder (!%p1447_p12), %s1438_s27, 0 }
  0x49   : > { %251 = sbr.rel (%p1447_p12) target bundleno = 652 (0x28c), region = 36  ;;  %s1288_s16 = sshll.u32 (!%p1447_p12), %s1285_s14, 2 }
  0x4a   : > { %s254_s1 = scalar_lea.sflag (!%p1447_p12), [#allocation3], %s1285_s14  ;;  %s257_s26 = scalar_lea.vmem (!%p1447_p12), [#allocation2], %s1288_s16 }
  0x4e   : > { %1100 = dma.done.wait (%p1448_p1), %s254_s1, 64  }
  0x4f   : > { %1102 = vsyncadd (%p1448_p1), %s254_s1, 4294967232  ;;  %p1449_p4 = scmp.eq.s32.totalorder %s1197_s25, 0 }
  0x51   : > { %1104 = dma.done.wait (%p1449_p4), [#allocation6], 3072   ;;  %p1450_p6 = pmov %p1449_p4 }
  0x52   : > { %v301_v0 = vld [vmem:[%s257_s26] sm:$0xf]  ;;  %v919_v3 = vld [vmem:[#allocation5 + $0xa8] ss:$12 sps:$4 sm:$0xff]   ;;  %v1135_v4 = vmov 0.0   ;;  %v1136_v23 = vmov 0  }
  0x53   : > { %1106 = vsyncadd (%p1450_p6), [#allocation6], 4294964224  ;;  %v302_v1 = vunpack.c.l.bf16 %v301_v0  ;;  %v917_v2 = vld [vmem:[#allocation5 + $0xac] ss:$12 sps:$4 sm:$0xff]   ;;  %825 = vmatprep.subr.bf16.mxu1 %v1135_v4  ;;  %v920_v5 = vld [vmem:[#allocation5 + $0xb0] ss:$12 sps:$4 sm:$0xff]   ;;  %524 = vmatprep.mubr.bf16.mxu0 %v1136_v23 }
  0x54   : > { %v921_v6 = vld [vmem:[#allocation5 + $0x94] ss:$12 sps:$4 sm:$0xff]   ;;  %492 = vmatprep.subr.bf16.mxu0 %v917_v2  ;;  %826 = vmatpush3.bf16.msra.mxu1 %v920_v5  ;;  %v923_v7 = vld [vmem:[#allocation5 + $0x90] ss:$12 sps:$4 sm:$0xff]   ;;  %v924_v8 = vld [vmem:[#allocation5 + $0x98] ss:$12 sps:$4 sm:$0xff]  }
  0x55   : > { %303 = vadd.xlane.f32.xlu0 %v302_v1  ;;  %493 = vmatpush1.bf16.msra.mxu0 %v919_v3  ;;  %v925_v13 = vld [vmem:[#allocation5 + $0x7c] ss:$12 sps:$4 sm:$0xff]   ;;  %v927_v14 = vld [vmem:[#allocation5 + $0x78] ss:$12 sps:$4 sm:$0xff]   ;;  %v928_v15 = vld [vmem:[#allocation5 + $0x80] ss:$12 sps:$4 sm:$0xff]  }
  0x56   : > { %494 = vmatprep.subr.bf16.mxu0 %v921_v6  ;;  %827 = vmatprep.subr.bf16.mxu1 %v1135_v4  ;;  %v929_v16 = vld [vmem:[#allocation5 + $0x64] ss:$12 sps:$4 sm:$0xff]   ;;  %v931_v17 = vld [vmem:[#allocation5 + $0x60] ss:$12 sps:$4 sm:$0xff]   ;;  %v932_v18 = vld [vmem:[#allocation5 + $0x68] ss:$12 sps:$4 sm:$0xff]  }
  0x57   : > { %v933_v19 = vld [vmem:[#allocation5 + $0x4c] ss:$12 sps:$4 sm:$0xff]   ;;  %v935_v20 = vld [vmem:[#allocation5 + $0x48] ss:$12 sps:$4 sm:$0xff]   ;;  %v936_v21 = vld [vmem:[#allocation5 + $0x50] ss:$12 sps:$4 sm:$0xff]  }
  0x58   : > { %828 = vmatpush3.bf16.msra.mxu1 %v924_v8  ;;  %v937_v22 = vld [vmem:[#allocation5 + $0x34] ss:$12 sps:$4 sm:$0xff]   ;;  %vm1137_vm0 = vmmov 0   ;;  %v939_v24 = vld [vmem:[#allocation5 + $0x30] ss:$12 sps:$4 sm:$0xff]   ;;  %s811_s13 = sshll.u32 %s1197_s25, 6 }
  0x59   : > { %495 = vmatpush1.bf16.msra.mxu0 %v923_v7  ;;  %829 = vmatprep.subr.bf16.mxu1 %v1135_v4  ;;  %v940_v25 = vld [vmem:[#allocation5 + $0x38] ss:$12 sps:$4 sm:$0xff]   ;;  %v941_v26 = vld [vmem:[#allocation5 + $0x1c] ss:$12 sps:$4 sm:$0xff]   ;;  %v944_v28 = vld [vmem:[#allocation5 + $0x20] ss:$12 sps:$4 sm:$0xff]   ;;  %s1316_s27 = scalar_lea.hbm %s1427_s4, %s811_s13  ;;  %s1323_s10 = scalar_lea.hbm %s1428_s5, %s811_s13 }
  0x5a   : > { %496 = vmatprep.subr.bf16.mxu0 %v925_v13  ;;  %841 = vmatprep.mubr.msk.bf16.mxu1 %vm1137_vm0, %v1135_v4  ;;  %v943_v27 = vld [vmem:[#allocation5 + $0x18] ss:$12 sps:$4 sm:$0xff]   ;;  %v947_v30 = vld [vmem:[#allocation5] ss:$12 sps:$4 sm:$0xff]   ;;  %v948_v31 = vld [vmem:[#allocation5 + $0x8] ss:$12 sps:$4 sm:$0xff]   ;;  %s1330_s11 = scalar_lea.hbm %s1429_s6, %s811_s13 }
  0x5b   : > { %v945_v29 = vld [vmem:[#allocation5 + $0x4] ss:$12 sps:$4 sm:$0xff]   ;;  %v782_v36 = vld [vmem:[%s1425_s2] ss:$0 sm:$0xff]  ;;  %s285_s20 = scalar_lea.vmem [#allocation7], %s1288_s16  ;;  %s299_s12 = scalar_lea.vmem [#allocation10], %s1288_s16 }
  0x5c   : > { %830 = vmatpush3.bf16.msra.mxu1 %v928_v15  ;;  %v783_v38 = vld [vmem:[%s1426_s3] ss:$0 sm:$0xff]  ;;  %s603_s8 = sshll.u32 %s285_s20, 4  ;;  %s629_s30 = sshll.u32 %s299_s12, 4  ;;  %s1318_s8 = int_to_ptr.vmem [resolvable:$true] %s603_s8  ;;  %s1332_s30 = int_to_ptr.vmem [resolvable:$true] %s629_s30 }
  0x5d   : > { %497 = vmatpush1.bf16.msra.mxu0 %v927_v14  ;;  %831 = vmatprep.subr.bf16.mxu1 %v1135_v4  ;;  %s1435_s7 = scalar_lea.vmem [#allocation8], %s1288_s16  ;;  %s1005_s0 = scalar_lea.vmem %s1318_s8, 64 }
  0x5e   : > { %498 = vmatprep.subr.bf16.mxu0 %v929_v16  ;;  %s616_s19 = sshll.u32 %s1435_s7, 4  ;;  %s580_s7 = scalar_lea.sflag [#allocation4], %s1285_s14  ;;  %s1325_s19 = int_to_ptr.vmem [resolvable:$true] %s616_s19 }
  0x5f   : > { %p1006_p8 = scmp.ne.s32.totalorder %s1318_s8, %s1005_s0  ;;  %p1451_p3 = scmp.ne.s32.totalorder %s1444_s18, 0 }
  0x60   : > { %832 = vmatpush3.bf16.msra.mxu1 %v932_v18  ;;  %s1138_s29 = smov [#allocation7]  }
  0x61   : > { %499 = vmatpush1.bf16.msra.mxu0 %v931_v17  ;;  %833 = vmatprep.subr.bf16.mxu1 %v1135_v4  ;;  %p1007_p11 = pnand %p1006_p8, %p1451_p3 }
  0x62   : > { %500 = vmatprep.subr.bf16.mxu0 %v933_v19 }
  0x63   : > { %p1008_p7 = pneg %p1007_p11 }
  0x64   : > { %834 = vmatpush3.bf16.msra.mxu1 %v936_v21 }
  0x65   : > { %501 = vmatpush1.bf16.msra.mxu0 %v935_v20  ;;  %835 = vmatprep.subr.bf16.mxu1 %v1135_v4 }
  0x66   : > { %502 = vmatprep.subr.bf16.mxu0 %v937_v22 }
  0x68   : > { %836 = vmatpush3.bf16.msra.mxu1 %v940_v25 }
  0x69   : > { %503 = vmatpush1.bf16.msra.mxu0 %v939_v24  ;;  %837 = vmatprep.subr.bf16.mxu1 %v1135_v4 }
  0x6a   : > { %504 = vmatprep.subr.bf16.mxu0 %v941_v26 }
  0x6c   : > { %838 = vmatpush3.bf16.msra.mxu1 %v944_v28 }
  0x6d   : > { %505 = vmatpush1.bf16.msra.mxu0 %v943_v27  ;;  %839 = vmatprep.subr.bf16.mxu1 %v1135_v4 }
  0x6e   : > { %506 = vmatprep.subr.bf16.mxu0 %v945_v29 }
  0x70   : > { %840 = vmatpush3.bf16.msra.mxu1 %v948_v31 }
  0x71   : > { %507 = vmatpush1.bf16.msra.mxu0 %v947_v30 }
  0xde   : > { %v304_v9 = vpop.xlane.xlu0 %303 }
  0xdf   : > { %v306_v10 = vmul.f32 0.0078125, %v304_v9 }
  0xe1   : > { %v307_v11 = vsub.f32 %v302_v1, %v306_v10 }
  0xe3   : > { %v308_v12 = vmul.f32 %v307_v11, %v307_v11 }
  0xe5   : > { %309 = vadd.xlane.f32.xlu0 %v308_v12 }
 0x16e   : > { %v310_v32 = vpop.xlane.xlu0 %309 }
 0x16f   : > { %v311_v33 = vmul.f32 0.0078125, %v310_v32 }
 0x171   : > { %v312_v34 = vadd.f32 1e-05, %v311_v33 }
 0x173   : > { %949 = vrsqrt.f32 %v312_v34 }
 0x180   : > { %v950_v35 = vpop.eup %949 }
 0x181   : > { %v314_v37 = vmul.f32 %v950_v35, %v307_v11 }
 0x183   : > { %v322_v39 = vmul.f32 %v782_v36, %v314_v37 }
 0x185   : > { %v330_v40 = vadd.f32 %v783_v38, %v322_v39 }
 0x187   : > { %v331_v41 = vpack.c.bf16 %v330_v40, %v330_v40 }
 0x189   : > { %525 = vmatmul.mubr.bf16.vlgmr.msra.gmra.mxu0 %v331_v41  ;;  %842 = vmatmul.mubr.bf16.vlgmr.msra.gmra.mxu1 %v331_v41 }
 0x249   : > { %v526_v42 = vpop.f32.mrf.mxu0  ;;  %v567_v43 = vpop.f32.mrf.mxu1 }
 0x24a   : > { %v573_v44 = vpack.c.bf16 %v526_v42, %v526_v42  ;;  %v577_v45 = vpack.c.bf16 %v567_v43, %v567_v43 }
 0x24b   : > { %v528_v46 = vpop.f32.mrf.mxu0  ;;  %v843_v47 = vpop.f32.mrf.mxu1 }
 0x24c   : > { %574 = vst [vmem:[%s285_s20] sm:$0xf] %v573_v44  ;;  %578 = vst [vmem:[%s299_s12] sm:$0xf] %v577_v45  ;;  %v575_v48 = vpack.c.bf16 %v528_v46, %v528_v46  ;;  %s1009_s20 = sshll.u32 %s1138_s29, 4  ;;  %s1010_s20 = int_to_ptr.vmem [resolvable:$false] %s1009_s20 }
 0x24d   : > { %v530_v49 = vpop.f32.mrf.mxu0  ;;  %v570_v50 = vpop.f32.mrf.mxu1  ;;  %s1011_s12 = scalar_lea.vmem %s1010_s20, 128  ;;  %p1012_p10 = scmp.lt.s32.totalorder %s1318_s8, %s1010_s20 }
 0x24e   : > { %p1013_p2 = scmp.lt.s32.totalorder %s1011_s12, %s1005_s0 }
 0x250   : > { %p1014_p13 = por %p1013_p2, %p1012_p10 }
 0x252   : > { %p1015_p0 = pnand %p1014_p13, %p1008_p7 }
 0x254   : > { %1018 = shalt.err (!%p1015_p0)
}
 0x255   : > { %s1019_s13 = scalar_lea.hbm %s1316_s27, 64  ;;  %s1023_s1 = scalar_lea.hbm %s1427_s4, 128 }
 0x256   : > { %p1020_p5 = scmp.ne.s32.totalorder %s1316_s27, %s1019_s13  ;;  %p1024_p1 = scmp.lt.s32.totalorder %s1316_s27, %s1427_s4 }
 0x257   : > { %p1025_p4 = scmp.lt.s32.totalorder %s1023_s1, %s1019_s13 }
 0x258   : > { %p1021_p9 = pnand %p1020_p5, %p1451_p3 }
 0x259   : > { %p1026_p6 = por %p1025_p4, %p1024_p1 }
 0x25a   : > { %p1022_p12 = pneg %p1021_p9 }
 0x25c   : > { %p1027_p8 = pnand %p1026_p6, %p1022_p12 }
 0x25e   : > { %1030 = shalt.err (!%p1027_p8)
}
 0x25f   : > { %851 = dma.vmem_to_hbm [thread:$0]  (%p1451_p3), %s1318_s8, 64, %s1316_s27, %s580_s7   ;;  %v531_v51 = vpop.f32.mrf.mxu0  ;;  %v844_v52 = vpop.f32.mrf.mxu1 }
 0x260   : > { %s1452_s0 = scalar_lea.vmem [#allocation8], %s1288_s16  ;;  %s1453_s20 = sand.u32 1, %s1197_s25  }
 0x261   : > { %576 = vst [vmem:[%s1452_s0] sm:$0xf] %v575_v48  ;;  %s1359_s12 = scalar_lea.sflag [#allocation9], %s1453_s20  ;;  %s1031_s13 = scalar_lea.vmem %s1325_s19, 64 }
 0x262   : > { %p1032_p11 = scmp.ne.s32.totalorder %s1325_s19, %s1031_s13  ;;  %s1139_s14 = smov [#allocation8]  }
 0x263   : > { %s1035_s15 = sshll.u32 %s1139_s14, 4  ;;  %s1036_s15 = int_to_ptr.vmem [resolvable:$false] %s1035_s15 }
 0x264   : > { %p1033_p7 = pnand %p1032_p11, %p1451_p3  ;;  %s1037_s1 = scalar_lea.vmem %s1036_s15, 128 }
 0x265   : > { %p1038_p2 = scmp.lt.s32.totalorder %s1325_s19, %s1036_s15  ;;  %p1039_p13 = scmp.lt.s32.totalorder %s1037_s1, %s1031_s13 }
 0x266   : > { %p1034_p10 = pneg %p1033_p7 }
 0x267   : > { %p1040_p0 = por %p1039_p13, %p1038_p2 }
 0x269   : > { %p1041_p5 = pnand %p1040_p0, %p1034_p10 }
 0x26b   : > { %1044 = shalt.err (!%p1041_p5)
}
 0x26c   : > { %s1045_s25 = scalar_lea.hbm %s1323_s10, 64  ;;  %s1049_s7 = scalar_lea.hbm %s1428_s5, 128 }
 0x26d   : > { %p1046_p9 = scmp.ne.s32.totalorder %s1323_s10, %s1045_s25  ;;  %p1050_p4 = scmp.lt.s32.totalorder %s1323_s10, %s1428_s5 }
 0x26e   : > { %p1051_p6 = scmp.lt.s32.totalorder %s1049_s7, %s1045_s25 }
 0x26f   : > { %p1047_p12 = pnand %p1046_p9, %p1451_p3 }
 0x270   : > { %p1052_p8 = por %p1051_p6, %p1050_p4 }
 0x271   : > { %p1048_p1 = pneg %p1047_p12 }
 0x273   : > { %p1053_p11 = pnand %p1052_p8, %p1048_p1 }
 0x275   : > { %1056 = shalt.err (!%p1053_p11)
}
 0x276   : > { %852 = dma.vmem_to_hbm [thread:$0]  (%p1451_p3), %s1325_s19, 64, %s1323_s10, %s1359_s12  }
 0x277   : > { %s1057_s29 = scalar_lea.vmem %s1332_s30, 64  ;;  %s1140_s0 = smov [#allocation10]  }
 0x278   : > { %p1058_p7 = scmp.ne.s32.totalorder %s1332_s30, %s1057_s29  ;;  %s1061_s20 = sshll.u32 %s1140_s0, 4  ;;  %s1062_s20 = int_to_ptr.vmem [resolvable:$false] %s1061_s20 }
 0x279   : > { %s1063_s13 = scalar_lea.vmem %s1062_s20, 128  ;;  %p1064_p13 = scmp.lt.s32.totalorder %s1332_s30, %s1062_s20 }
 0x27a   : > { %p1059_p10 = pnand %p1058_p7, %p1451_p3  ;;  %p1065_p0 = scmp.lt.s32.totalorder %s1063_s13, %s1057_s29 }
 0x27c   : > { %p1060_p2 = pneg %p1059_p10  ;;  %p1066_p5 = por %p1065_p0, %p1064_p13 }
 0x27e   : > { %p1067_p9 = pnand %p1066_p5, %p1060_p2 }
 0x280   : > { %1070 = shalt.err (!%p1067_p9)
}
 0x281   : > { %s1071_s14 = scalar_lea.hbm %s1330_s11, 64  ;;  %s1075_s15 = scalar_lea.hbm %s1429_s6, 128 }
 0x282   : > { %p1072_p12 = scmp.ne.s32.totalorder %s1330_s11, %s1071_s14  ;;  %p1076_p6 = scmp.lt.s32.totalorder %s1330_s11, %s1429_s6 }
 0x283   : > { %p1077_p8 = scmp.lt.s32.totalorder %s1075_s15, %s1071_s14 }
 0x284   : > { %p1073_p1 = pnand %p1072_p12, %p1451_p3 }
 0x285   : > { %p1078_p11 = por %p1077_p8, %p1076_p6 }
 0x286   : > { %p1074_p4 = pneg %p1073_p1 }
 0x288   : > { %p1079_p7 = pnand %p1078_p11, %p1074_p4 }
 0x28a   : > { %1082 = shalt.err (!%p1079_p7)
}
 0x28b   : > { %853 = dma.vmem_to_hbm [thread:$0]  (%p1451_p3), %s1332_s30, 64, %s1330_s11, %s1359_s12  }
 0x28c PF: > { %s641_s16 = sand.u32 1, %s1117_s21   ;;  %p1454_p10 = scmp.ne.s32.totalorder %s1439_s28, 0 }
 0x28d   : > { %p1455_p2 = scmp.ge.s32.totalorder %s1129_s24, 2  ;;  %s642_s8 = scalar_lea.sflag [#allocation4], %s641_s16 }
 0x28f   : > { %p866_p13 = pnand %p1455_p2, %p1454_p10 }
 0x291   : > { %p867_p0 = pneg %p866_p13 }
 0x293   : > { %1108 = dma.done.wait (%p867_p0), %s642_s8, 64  }
 0x294   : > { %1110 = vsyncadd (%p867_p0), %s642_s8, 4294967232  ;;  %s1456_s7 = sadd.s32 4294967294, %s1129_s24  }
 0x295   : > { %s650_s27 = sand.u32 1, %s1456_s7  }
 0x296   : > { %s651_s18 = scalar_lea.sflag [#allocation9], %s650_s27 }
 0x297   : > { %1112 = dma.done.wait (%p867_p0), %s651_s18, 128  }
 0x298   : > { %1114 = vsyncadd (%p867_p0), %s651_s18, 4294967168  ;;  %p24_p3 = scmp.ge.s32.totalorder %s1232_s9, 4   ;;  %s1457_s21 = smov %s1121_s22 }
 0x299   : > { %s1458_s22 = smov %s1125_s23  ;;  %s1459_s23 = smov %s1249_s17 }
 0x29a   : > { %s1460_s24 = smov %s1232_s9  ;;  %26 = sbr.rel (!%p24_p3) target bundleno = 11 (0xb), region = 117 }
 0x29f   :  { %665 = vsyncpa [#allocation3], 1 }
 0x2a0   :  { %667 = vsyncpa [#allocation3 + $0x1], 1 }
 0x2a1   :  { %668 = vsyncpa [#allocation6], 1 }
 0x2a2   :  { %669 = vsyncpa [#allocation4], 1 }
 0x2a3   :  { %671 = vsyncpa [#allocation4 + $0x1], 1 }
 0x2a4   :  { %672 = vsyncpa [#allocation9], 1 }
 0x2a5   :  { %674 = vsyncpa [#allocation9 + $0x1], 1 }

</bundles_post_ra>
